<compile_context>
chip_gen: v7x
topology: tpu7x:2x2x1
jax: 0.10.0
libtpu: 0.0.40
codegen_flags: <defaults>
</compile_context>

<pallas_src>
import functools

import jax
import jax.numpy as jnp
from jax.experimental import pallas as pl
from jax.experimental.pallas import tpu as pltpu  # noqa: F401  (TPU backend)


def _relu_kernel(x_ref, o_ref):
    # Elementwise ReLU on the whole VMEM tile: one VPU max per vreg.
    zero = jnp.zeros((), dtype=x_ref.dtype)
    o_ref[...] = jnp.maximum(x_ref[...], zero)


def _largest_divisor_leq_8(n: int) -> int:
    for r in (8, 7, 6, 5, 4, 3, 2):
        if n % r == 0:
            return r
    return 1


@functools.partial(jax.jit, donate_argnums=0)
def relu_pallas(x):
    """ReLU(x); semantics identical to torch.nn.ReLU(inplace=True).

    Elementwise and layout-agnostic, so we present a lane-dense 2D slab to the
    kernel (free bitcast under jit) and reshape back in the wrapper.  The input
    buffer is donated and aliased to the output (true in-place update)."""
    orig_shape = x.shape
    total = 1
    for d in orig_shape:
        total *= d

    # Lane-dense flattening: as many sublane rows as divide the element count
    # (up to 8) so the last dim is as wide as possible.  9408 -> (8, 1176).
    rows = _largest_divisor_leq_8(total)
    cols = total // rows
    x2d = x.reshape(rows, cols)

    itemsize = jnp.dtype(x2d.dtype).itemsize
    out2d = pl.pallas_call(
        _relu_kernel,
        out_shape=jax.ShapeDtypeStruct(x2d.shape, x2d.dtype),
        # Single block covering the full array (no (8,128) divisibility
        # constraint when block_shape == array shape); no grid -> no per-step
        # pipeline overhead.
        in_specs=[pl.BlockSpec(x2d.shape, lambda: (0, 0))],
        out_specs=pl.BlockSpec(x2d.shape, lambda: (0, 0)),
        # ReLU is in-place safe -> reuse the (donated) input buffer.
        input_output_aliases={0: 0},
        # Advisory hint: this custom call is tiny.
        cost_estimate=pl.CostEstimate(
            flops=total,
            transcendentals=0,
            bytes_accessed=2 * total * itemsize,
        ),
    )(x2d)

    return out2d.reshape(orig_shape)


if __name__ == "__main__":
    key = jax.random.PRNGKey(0)
    # Same shape as the reference module's input: [1, 192, 7, 7]
    x = jax.random.normal(key, (1, 192, 7, 7), dtype=jnp.float32)

    # Compute the reference BEFORE the donated call so x's buffer can be
    # genuinely reused in-place (x is not used again after relu_pallas).
    y_ref = jnp.maximum(x, 0.0)
    jax.block_until_ready(y_ref)

    y = relu_pallas(x)
    jax.block_until_ready(y)

    # Sanity check against plain JAX reference.
    assert y.shape == (1, 192, 7, 7) and y.dtype == jnp.float32
    assert bool(jnp.allclose(y, y_ref)), "mismatch vs reference ReLU"

    print("KERNEL_OK")
</pallas_src>

<mosaic_0001>
module attributes {stable_mosaic.version = 11 : i64} {
  func.func @_relu_kernel(%arg0: memref<8x1176xf32, #tpu.memory_space<vmem>>, %arg1: memref<8x1176xf32, #tpu.memory_space<vmem>>) attributes {dimension_semantics = [], scalar_prefetch = 0 : i64, scratch_operands = 0 : i64, tpu.core_type = #tpu.core_type<tc>} {
    %c0 = arith.constant 0 : index
    %c0_0 = arith.constant 0 : index
    %0 = vector.load %arg0[%c0, %c0_0] : memref<8x1176xf32, #tpu.memory_space<vmem>>, vector<8x1176xf32>
    %cst = arith.constant 0.000000e+00 : f32
    %1 = vector.broadcast %cst : f32 to vector<8x1176xf32>
    %2 = arith.maximumf %0, %1 : vector<8x1176xf32>
    %c0_1 = arith.constant 0 : index
    %c0_2 = arith.constant 0 : index
    %3 = vector.load %arg1[%c0_1, %c0_2] : memref<8x1176xf32, #tpu.memory_space<vmem>>, vector<8x1176xf32>
    tpu.vector_store %arg1[%c0_1, %c0_2], %2 {strides = array<i32>} : memref<8x1176xf32, #tpu.memory_space<vmem>>, vector<8x1176xf32>,
    return
  }
}

</mosaic_0001>

<bundles_post_ra>
// kernel: relu_pallas.1
= control target key start
LH: loop header
LB: loop body
LE: loop exit
PB: predicated region body
PF: predicated region fallthrough
CT: control target
= control target key end

     0   :  { %vm37_vm0 = vcmask 195584   ;;  %s113_s0 = inlined_call_operand.vmem [shape: f32[8,1176], index: 0, kind: input, shape index: {}, may-alias: {0,1}]   ;;  %s114_s1 = inlined_call_operand.vmem [shape: f32[8,1176], index: 1, kind: output, shape index: {}, may-alias: {0,1}]  }
   0x1   :  { %v8_v0 = vld [vmem:[%s113_s0] sm:$0xff]  ;;  %v9_v1 = vld [vmem:[%s113_s0 + $0x8] sm:$0xff]  ;;  %v10_v2 = vld [vmem:[%s113_s0 + $0x10] sm:$0xff] }
   0x2   :  { %v18_v3 = vmax.f32 %v8_v0, 0.0  ;;  %v19_v4 = vmax.f32 %v9_v1, 0.0  ;;  %v20_v5 = vmax.f32 %v10_v2, 0.0  ;;  %v11_v6 = vld [vmem:[%s113_s0 + $0x18] sm:$0xff]  ;;  %v12_v7 = vld [vmem:[%s113_s0 + $0x20] sm:$0xff]  ;;  %v13_v8 = vld [vmem:[%s113_s0 + $0x28] sm:$0xff] }
   0x3   :  { %v21_v9 = vmax.f32 %v11_v6, 0.0  ;;  %v22_v10 = vmax.f32 %v12_v7, 0.0  ;;  %v23_v11 = vmax.f32 %v13_v8, 0.0  ;;  %v14_v12 = vld [vmem:[%s113_s0 + $0x30] sm:$0xff]  ;;  %v15_v13 = vld [vmem:[%s113_s0 + $0x38] sm:$0xff]  ;;  %v16_v14 = vld [vmem:[%s113_s0 + $0x40] sm:$0xff] }
   0x4   :  { %28 = vst [vmem:[%s114_s1] sm:$0xff] %v18_v3  ;;  %29 = vst [vmem:[%s114_s1 + $0x8] sm:$0xff] %v19_v4  ;;  %v24_v15 = vmax.f32 %v14_v12, 0.0  ;;  %v25_v16 = vmax.f32 %v15_v13, 0.0  ;;  %v26_v17 = vmax.f32 %v16_v14, 0.0 }
   0x5   :  { %30 = vst [vmem:[%s114_s1 + $0x10] sm:$0xff] %v20_v5 }
   0xc   :  { %v17_v18 = vld [vmem:[%s113_s0 + $0x48] sm:$0xff] }
   0xd   :  { %31 = vst [vmem:[%s114_s1 + $0x18] sm:$0xff] %v21_v9  ;;  %32 = vst [vmem:[%s114_s1 + $0x20] sm:$0xff] %v22_v10  ;;  %v27_v19 = vmax.f32 %v17_v18, 0.0 }
   0xe   :  { %33 = vst [vmem:[%s114_s1 + $0x28] sm:$0xff] %v23_v11  ;;  %34 = vst [vmem:[%s114_s1 + $0x30] sm:$0xff] %v24_v15 }
   0xf   :  { %35 = vst [vmem:[%s114_s1 + $0x38] sm:$0xff] %v25_v16  ;;  %36 = vst [vmem:[%s114_s1 + $0x40] sm:$0xff] %v26_v17 }
  0x10   :  { %38 = vst.msk [vmem:[%s114_s1 + $0x48] sm:$0xff] %vm37_vm0, %v27_v19 }

</bundles_post_ra>
